<compile_context>
chip_gen: v7x
topology: tpu7x:2x2x1
jax: 0.10.0
libtpu: 0.0.40
codegen_flags: <defaults>
</compile_context>

<pallas_src>
import jax
import jax.numpy as jnp
from jax.experimental import pallas as pl
from jax.experimental.pallas import tpu as pltpu


def _affine_kernel(x_ref, scale_ref, bias_ref, o_ref):
    # Pure VPU: y = x * scale + bias.  scale/bias are (1, L) resident blocks
    # broadcast against the (TILE_ROWS, L) input tile.
    o_ref[...] = (x_ref[...] * scale_ref[...] + bias_ref[...]).astype(o_ref.dtype)


def minmax_scaler_forward(
    x: jax.Array,
    inv_range: jax.Array,
    bias: jax.Array,
    *,
    tile_rows: int = 1024,
) -> jax.Array:
    """Pallas implementation of the fitted MinMaxScaler forward pass.

    x:         [N, D] float32
    inv_range: [D]    float32   (1 / (max - min); the diagonal of the Linear weight)
    bias:      [D]    float32   (-min / (max - min))
    """
    n, d = x.shape

    # --- lane-dense repacking -------------------------------------------------
    # If D is a small divisor of 128 and the flat size is a multiple of 128,
    # view x row-major as [N*D/128, 128] and tile scale/bias along the lane
    # axis, so every vreg / store uses all 128 lanes.
    if d < 128 and 128 % d == 0 and (n * d) % 128 == 0:
        reps = 128 // d
        rows, lane = (n * d) // 128, 128
        x2 = x.reshape(rows, lane)
        scale2 = jnp.tile(inv_range, reps).reshape(1, lane)
        bias2 = jnp.tile(bias, reps).reshape(1, lane)
    else:
        rows, lane = n, d
        x2 = x
        scale2 = inv_range.reshape(1, lane)
        bias2 = bias.reshape(1, lane)

    # --- row tiling -----------------------------------------------------------
    # Tile rows (multiple of 8 sublanes) capped at `tile_rows`; a 1024x128 f32
    # tile is 512 KiB, so double-buffered in+out stays ~2 MiB — comfortably
    # inside v7x's 64 MiB VMEM (and its 32 MiB default scoped limit).
    if rows <= 8:
        tr = rows  # full-extent block (satisfies the (8,128) rule)
    else:
        tr = max(8, (min(tile_rows, rows) // 8) * 8)

    grid = (pl.cdiv(rows, tr),)

    out = pl.pallas_call(
        _affine_kernel,
        out_shape=jax.ShapeDtypeStruct((rows, lane), x.dtype),
        grid=grid,
        in_specs=[
            pl.BlockSpec((tr, lane), lambda i: (i, 0)),   # streamed x tiles
            pl.BlockSpec((1, lane), lambda i: (0, 0)),    # resident scale
            pl.BlockSpec((1, lane), lambda i: (0, 0)),    # resident bias
        ],
        out_specs=pl.BlockSpec((tr, lane), lambda i: (i, 0)),
        compiler_params=pltpu.CompilerParams(
            dimension_semantics=("parallel",),  # lets v7x shard row tiles across 2 TCs
        ),
    )(x2, scale2, bias2)

    return out.reshape(n, d)


def minmax_fit(fit_data: jax.Array):
    """Reproduce MinMaxScaler.fit, returning the per-feature affine params.

    inv_range = 1 / (max - min)  (diagonal of the Linear weight)
    bias      = -min * inv_range
    Constant columns (max == min) are guarded to avoid inf/nan.
    """
    maximum = fit_data.max(axis=0)
    minimum = fit_data.min(axis=0)
    rng = maximum - minimum
    rng = jnp.where(rng == 0.0, 1.0, rng)  # guard zero-range features
    inv_range = 1.0 / rng
    bias = -minimum * inv_range
    return inv_range, bias


if __name__ == "__main__":
    key = jax.random.PRNGKey(0)
    k_fit, k_x = jax.random.split(key)

    state_dim = 32   # D (feature axis)
    n_fit = 64       # samples used to "fit" min/max
    n = 8            # forward batch

    # Deterministic synthetic data for fitting the scaler parameters.
    fit_data = jax.random.uniform(
        k_fit, (n_fit, state_dim), dtype=jnp.float32, minval=-3.0, maxval=5.0
    )
    inv_range, bias = minmax_fit(fit_data)

    # Forward input.
    x = jax.random.uniform(
        k_x, (n, state_dim), dtype=jnp.float32, minval=-3.0, maxval=5.0
    )

    y = minmax_scaler_forward(x, inv_range, bias)
    y = jax.block_until_ready(y)

    # Pure-JAX reference with nn.Linear semantics (weight = diag(inv_range)).
    weight = jnp.diag(inv_range)
    y_ref = x @ weight.T + bias
    assert y.shape == (n, state_dim)
    assert jnp.allclose(y, y_ref, atol=1e-5, rtol=1e-5), "mismatch vs reference"

    print("KERNEL_OK")
</pallas_src>

<mosaic_0001>
module attributes {stable_mosaic.version = 11 : i64} {
  func.func @_affine_kernel(%arg0: i32, %arg1: memref<2x128xf32, #tpu.memory_space<vmem>>, %arg2: memref<1x128xf32, #tpu.memory_space<vmem>>, %arg3: memref<1x128xf32, #tpu.memory_space<vmem>>, %arg4: memref<2x128xf32, #tpu.memory_space<vmem>>) attributes {dimension_semantics = [#tpu.dimension_semantics<parallel>], iteration_bounds = array<i64: 1>, scalar_prefetch = 0 : i64, scratch_operands = 0 : i64, tpu.core_type = #tpu.core_type<tc>, window_params = [{transform_indices = @transform_0, window_bounds = array<i64: 2, 128>}, {pipeline_mode = #tpu.pipeline_mode<synchronous>, transform_indices = @transform_1, window_bounds = array<i64: 1, 128>}, {pipeline_mode = #tpu.pipeline_mode<synchronous>, transform_indices = @transform_2, window_bounds = array<i64: 1, 128>}, {transform_indices = @transform_3, window_bounds = array<i64: 2, 128>}]} {
    %c0 = arith.constant 0 : index
    %c0_0 = arith.constant 0 : index
    %0 = vector.load %arg1[%c0, %c0_0] : memref<2x128xf32, #tpu.memory_space<vmem>>, vector<2x128xf32>
    %c0_1 = arith.constant 0 : index
    %c0_2 = arith.constant 0 : index
    %1 = vector.load %arg2[%c0_1, %c0_2] : memref<1x128xf32, #tpu.memory_space<vmem>>, vector<1x128xf32>
    %2 = vector.broadcast %1 : vector<1x128xf32> to vector<2x128xf32>
    %3 = arith.mulf %0, %2 : vector<2x128xf32>
    %c0_3 = arith.constant 0 : index
    %c0_4 = arith.constant 0 : index
    %4 = vector.load %arg3[%c0_3, %c0_4] : memref<1x128xf32, #tpu.memory_space<vmem>>, vector<1x128xf32>
    %5 = vector.broadcast %4 : vector<1x128xf32> to vector<2x128xf32>
    %6 = arith.addf %3, %5 : vector<2x128xf32>
    %c0_5 = arith.constant 0 : index
    %c0_6 = arith.constant 0 : index
    %7 = vector.load %arg4[%c0_5, %c0_6] : memref<2x128xf32, #tpu.memory_space<vmem>>, vector<2x128xf32>
    tpu.vector_store %arg4[%c0_5, %c0_6], %6 {strides = array<i32>} : memref<2x128xf32, #tpu.memory_space<vmem>>, vector<2x128xf32>,
    return
  }
  func.func @transform_0(%arg0: i32) -> (i32, i32) {
    %c0_i32 = arith.constant 0 : i32
    %c0_i32_0 = arith.constant 0 : i32
    return %arg0, %c0_i32 : i32, i32
  }
  func.func @transform_1(%arg0: i32) -> (i32, i32) {
    %c0_i32 = arith.constant 0 : i32
    %c0_i32_0 = arith.constant 0 : i32
    %c0_i32_1 = arith.constant 0 : i32
    return %c0_i32, %c0_i32_0 : i32, i32
  }
  func.func @transform_2(%arg0: i32) -> (i32, i32) {
    %c0_i32 = arith.constant 0 : i32
    %c0_i32_0 = arith.constant 0 : i32
    %c0_i32_1 = arith.constant 0 : i32
    return %c0_i32, %c0_i32_0 : i32, i32
  }
  func.func @transform_3(%arg0: i32) -> (i32, i32) {
    %c0_i32 = arith.constant 0 : i32
    %c0_i32_0 = arith.constant 0 : i32
    return %arg0, %c0_i32 : i32, i32
  }
}

</mosaic_0001>

<bundles_post_ra>
// kernel: tpu_custom_call.1
= control target key start
LH: loop header
LB: loop body
LE: loop exit
PB: predicated region body
PF: predicated region fallthrough
CT: control target
= control target key end

     0   :  { %8 = vsyncpa [#allocation3], 0  ;;  %s164_s0 = inlined_call_operand.hbm [shape: f32[2,128], index: 0, kind: input, shape index: {}]   ;;  %s165_s1 = inlined_call_operand.vmem [shape: f32[1,128], index: 1, kind: input, shape index: {}]   ;;  %s166_s2 = inlined_call_operand.vmem [shape: f32[1,128], index: 2, kind: input, shape index: {}]   ;;  %s167_s3 = inlined_call_operand.hbm [shape: f32[2,128], index: 3, kind: output, shape index: {}]  }
   0x1   :  { %9 = vsyncpa [#allocation4], 0  ;;  %s112_s12 = smov [#allocation2]   ;;  %s64_s16 = scalar_lea.hbm %s164_s0, 32 }
   0x2   :  { %s16_s13 = sshll.u32 %s112_s12, 4  ;;  %p65_p0 = scmp.ne.s32.totalorder %s164_s0, %s64_s16  ;;  %s17_s13 = int_to_ptr.vmem [resolvable:$true] %s16_s13 }
   0x3   :  { %p68_p1 = scmp.lt.u32.totalorder %s64_s16, %s164_s0 }
   0x5   :  { %p70_p2 = pnand %p68_p1, %p65_p0 }
   0x7   :  { %73 = shalt.err (!%p70_p2)
}
   0x8   :  { %s74_s21 = scalar_lea.vmem %s17_s13, 32  ;;  %p79_p4 = scmp.lt.s32.totalorder %s17_s13, %s17_s13 }
   0x9   :  { %p75_p3 = scmp.ne.s32.totalorder %s17_s13, %s74_s21  ;;  %p80_p5 = scmp.lt.s32.totalorder %s74_s21, %s74_s21 }
   0xb   :  { %p81_p6 = por %p80_p5, %p79_p4 }
   0xd   :  { %p82_p7 = pnand %p81_p6, %p75_p3 }
   0xf   :  { %85 = shalt.err (!%p82_p7)
}
  0x10   :  { %19 = dma.hbm_to_vmem [thread:$0]  %s164_s0, 32, %s17_s13, [#allocation3]  }
  0x11   :  { %108 = dma.done.wait [#allocation3], 32  }
  0x12   :  { %109 = vsyncadd [#allocation3], 4294967264  ;;  %s113_s24 = smov [#allocation5]   ;;  %v27_v0 = vld [vmem:[#allocation2] sm:$0x3] }
  0x13   :  { %s51_s25 = sshll.u32 %s113_s24, 4  ;;  %v60_v1 = vld [vmem:[%s165_s1] ss:$0 sm:$0xff]  ;;  %s52_s25 = int_to_ptr.vmem [resolvable:$true] %s51_s25 }
  0x14   :  { %v61_v2 = vld [vmem:[%s166_s2] ss:$0 sm:$0xff]  ;;  %v35_v3 = vmul.f32 %v60_v1, %v27_v0  ;;  %s86_s30 = scalar_lea.vmem %s52_s25, 32  ;;  %p91_p9 = scmp.lt.s32.totalorder %s52_s25, %s52_s25 }
  0x15   :  { %p87_p8 = scmp.ne.s32.totalorder %s52_s25, %s86_s30  ;;  %p92_p10 = scmp.lt.s32.totalorder %s86_s30, %s86_s30 }
  0x16   :  { %v43_v4 = vadd.f32 %v61_v2, %v35_v3 }
  0x17   :  { %p93_p11 = por %p92_p10, %p91_p9 }
  0x18   :  { %44 = vst [vmem:[#allocation5] sm:$0x3] %v43_v4 }
  0x19   :  { %p94_p12 = pnand %p93_p11, %p87_p8 }
  0x1b   :  { %97 = shalt.err (!%p94_p12)
}
  0x1c   :  { %s98_s5 = scalar_lea.hbm %s167_s3, 32 }
  0x1d   :  { %p99_p13 = scmp.ne.s32.totalorder %s167_s3, %s98_s5  ;;  %p102_p0 = scmp.lt.u32.totalorder %s98_s5, %s167_s3 }
  0x1f   :  { %p104_p1 = pnand %p102_p0, %p99_p13 }
  0x21   :  { %107 = shalt.err (!%p104_p1)
}
  0x22   :  { %54 = dma.vmem_to_hbm [thread:$0]  %s52_s25, 32, %s167_s3, [#allocation4]  }
  0x23   :  { %110 = dma.done.wait [#allocation4], 32  }
  0x24   :  { %111 = vsyncadd [#allocation4], 4294967264 }
  0x25   :  { %58 = vsyncpa [#allocation3], 1 }
  0x26   :  { %59 = vsyncpa [#allocation4], 1 }

</bundles_post_ra>
